<compile_context>
chip_gen: v7x
topology: tpu7x:2x2x1
jax: 0.10.0
libtpu: 0.0.40
codegen_flags: <defaults>
</compile_context>

<pallas_src>
import functools

import jax
import jax.numpy as jnp
from jax import lax
from jax.experimental import pallas as pl
from jax.experimental.pallas import tpu as pltpu

LEAKY_SLOPE = 0.01   # F.leaky_relu default negative_slope
GN_EPS = 1e-5        # nn.GroupNorm default eps


# --------------------------------------------------------------------------
# Pallas kernels
# --------------------------------------------------------------------------
def _head_kernel(*refs, H, W, KH, KW, Cout, G, n_in, upsample, has_bias, has_mul):
    """Per-sample fused head:
       [optional in-kernel W-axis bilinear interp (pre-padded via interp matrix)]
       + conv (stride 1) over one or more channel-split inputs
       + optional coord-bias add + GroupNorm + leaky_relu + optional mutan mul.

    refs order: x_0..x_{n-1}, [aw_pad], w_0..w_{n-1}, gamma, beta,
                [coord_bias], [mul], out
    """
    idx = 0
    x_refs = refs[idx:idx + n_in]; idx += n_in
    aw_ref = None
    if upsample:
        aw_ref = refs[idx]; idx += 1
    w_refs = refs[idx:idx + n_in]; idx += n_in
    gamma_ref, beta_ref = refs[idx], refs[idx + 1]; idx += 2
    bias_ref = refs[idx] if has_bias else None; idx += int(has_bias)
    mul_ref = refs[idx] if has_mul else None; idx += int(has_mul)
    o_ref = refs[idx]

    acc = jnp.zeros((H * W, Cout), jnp.float32)
    for i in range(n_in):
        Ci = x_refs[i].shape[-1]
        if upsample:
            # Input is H-interpolated + H-padded: (Hp, Win, Ci), f32.
            x_i = x_refs[i][0]
            Hp, Win = x_i.shape[0], x_i.shape[1]
            for kw in range(KW):
                # The conv's kw shift and zero padding are folded into the
                # (row-shifted, zero-row-padded) interpolation matrix slice, so
                # no sublane-misaligned value slicing is needed.
                aw_kw = aw_ref[kw:kw + W, :]                       # (W, Win)
                awb = jnp.broadcast_to(aw_kw[None], (Hp, W, Win))
                col = jnp.einsum("how,hwc->hoc", awb, x_i,
                                 preferred_element_type=jnp.float32)  # (Hp, W, Ci)
                for kh in range(KH):
                    patch = col[kh:kh + H].reshape(H * W, Ci).astype(jnp.bfloat16)
                    acc = acc + jnp.dot(patch, w_refs[i][kh * KW + kw],
                                        preferred_element_type=jnp.float32)
        else:
            # Pre-padded input (Hp, Wp, Ci): one sublane-shifted ref read per kw.
            for kw in range(KW):
                col = x_refs[i][0, :, kw:kw + W, :]                # (Hp, W, Ci)
                for kh in range(KH):
                    patch = col[kh:kh + H].reshape(H * W, Ci).astype(jnp.bfloat16)
                    acc = acc + jnp.dot(patch, w_refs[i][kh * KW + kw],
                                        preferred_element_type=jnp.float32)

    if has_bias:
        acc = acc + bias_ref[...]                                  # coord-channel term

    # GroupNorm: per-sample stats over (H, W, channels-in-group).  Channel<->group
    # one-hot matrices are built from 2-D iotas (compile-time, no extra inputs).
    Cg = Cout // G
    n = float(H * W * Cg)
    c_i = lax.broadcasted_iota(jnp.int32, (Cout, G), 0)
    g_i = lax.broadcasted_iota(jnp.int32, (Cout, G), 1)
    gmat = ((c_i >= g_i * Cg) & (c_i < (g_i + 1) * Cg)).astype(jnp.float32)
    c_t = lax.broadcasted_iota(jnp.int32, (G, Cout), 1)
    g_t = lax.broadcasted_iota(jnp.int32, (G, Cout), 0)
    gmat_t = ((c_t >= g_t * Cg) & (c_t < (g_t + 1) * Cg)).astype(jnp.float32)

    s = jnp.sum(acc, axis=0, keepdims=True)                        # (1, Cout)
    ss = jnp.sum(acc * acc, axis=0, keepdims=True)                 # (1, Cout)
    mean_g = jnp.dot(s, gmat, preferred_element_type=jnp.float32) / n      # (1, G)
    var_g = jnp.dot(ss, gmat, preferred_element_type=jnp.float32) / n - mean_g * mean_g
    inv_g = lax.rsqrt(var_g + GN_EPS)
    mean_c = jnp.dot(mean_g, gmat_t, preferred_element_type=jnp.float32)   # (1, Cout)
    inv_c = jnp.dot(inv_g, gmat_t, preferred_element_type=jnp.float32)

    y = (acc - mean_c) * inv_c * gamma_ref[...] + beta_ref[...]
    y = jnp.where(y > 0, y, LEAKY_SLOPE * y)                       # leaky_relu
    if has_mul:
        y = y * mul_ref[0]                                         # fused mutan multiply
    o_ref[0] = y.reshape(H, W, Cout)


def _hinterp_kernel(x_ref, ah_ref, o_ref):
    # x: (1, Hin, Win*C), ah_pad: (Hp, Hin) -> one 2-D MXU matmul per sample.
    # ah_pad carries zero rows top/bottom so the result is already H-padded.
    o_ref[0] = jnp.dot(ah_ref[...], x_ref[0], preferred_element_type=jnp.float32)


# --------------------------------------------------------------------------
# helpers
# --------------------------------------------------------------------------
def _coord_grid(H, W):
    ys = jnp.linspace(-1.0, 1.0, H, dtype=jnp.float32)
    xs = jnp.linspace(-1.0, 1.0, W, dtype=jnp.float32)
    gy = jnp.broadcast_to(ys[:, None], (H, W))
    gx = jnp.broadcast_to(xs[None, :], (H, W))
    return jnp.stack([gx, gy], axis=-1)                            # (H, W, 2)


def _coord_bias(w_coord_bf16, H, W, ksize, pad, Cout):
    """Batch-independent contribution of the 2 coord channels, (H*W, Cout) f32."""
    coord = _coord_grid(H, W).astype(jnp.bfloat16)[None]           # (1, H, W, 2)
    w_hwio = w_coord_bf16.reshape(ksize, ksize, 2, Cout)
    b = lax.conv_general_dilated(coord, w_hwio, (1, 1),
                                 [(pad, pad), (pad, pad)],
                                 dimension_numbers=("NHWC", "HWIO", "NHWC"),
                                 preferred_element_type=jnp.float32)
    return b[0].reshape(H * W, Cout)


def _interp_matrix(n_out, n_in):
    """Row-stochastic matrix reproducing PyTorch bilinear, align_corners=False."""
    o = jnp.arange(n_out, dtype=jnp.float32)
    src = (o + 0.5) * (float(n_in) / float(n_out)) - 0.5
    src = jnp.maximum(src, 0.0)                       # PyTorch clamps negatives
    i0 = jnp.minimum(jnp.floor(src).astype(jnp.int32), n_in - 1)
    i1 = jnp.minimum(i0 + 1, n_in - 1)
    w1 = src - i0.astype(jnp.float32)
    w0 = 1.0 - w1
    return (w0[:, None] * jax.nn.one_hot(i0, n_in, dtype=jnp.float32)
            + w1[:, None] * jax.nn.one_hot(i1, n_in, dtype=jnp.float32))


def _h_interp_pad(x, h_out, pad):
    """H-axis bilinear interp + H zero-padding, as one 2-D MXU matmul per sample."""
    B, Hin, Win, C = x.shape
    ah_pad = jnp.pad(_interp_matrix(h_out, Hin), ((pad, pad), (0, 0)))
    Hp = h_out + 2 * pad
    x2 = x.reshape(B, Hin, Win * C)                   # free metadata reshape
    y2 = pl.pallas_call(
        _hinterp_kernel,
        out_shape=jax.ShapeDtypeStruct((B, Hp, Win * C), jnp.float32),
        grid_spec=pltpu.PrefetchScalarGridSpec(
            num_scalar_prefetch=0, grid=(B,),
            in_specs=[pl.BlockSpec((1, Hin, Win * C), lambda b: (b, 0, 0)),
                      pl.BlockSpec((Hp, Hin), lambda b: (0, 0))],
            out_specs=pl.BlockSpec((1, Hp, Win * C), lambda b: (b, 0, 0))),
        compiler_params=pltpu.CompilerParams(dimension_semantics=("parallel",)),
    )(x2, ah_pad)
    return y2.reshape(B, Hp, Win, C)                  # free metadata reshape


# --------------------------------------------------------------------------
# Fused SingleHead wrapper
# --------------------------------------------------------------------------
def single_head(xs, p, *, ksize, pad, groups, coord=False, upsample_to=None, mul=None):
    """Fused SingleHead (conv -> GN -> leaky_relu) over one or more inputs.

    xs: list of (B, Hin, Win, Ci) inputs (same spatial dims); conv-over-concat
        is computed as a sum of convs with channel-split weights.
    upsample_to=(H, W): bilinearly upsample all inputs (align_corners=False)
        before the conv; the W-interp and zero padding are fused into the kernel.
    mul: optional (B, Cout), multiplied into the activation (fused mutan)."""
    B = xs[0].shape[0]
    cins = [x.shape[-1] for x in xs]
    w = p["w"]
    KHW, Cin_w, Cout = w.shape
    assert KHW == ksize * ksize
    assert Cin_w == sum(cins) + (2 if coord else 0)

    w_bf = w.astype(jnp.bfloat16)
    w_parts, off = [], 0
    for c in cins:
        w_parts.append(w_bf[:, off:off + c, :])
        off += c

    upsample = upsample_to is not None
    if upsample:
        H, W = upsample_to
        Win = xs[0].shape[2]
        aw_pad = jnp.pad(_interp_matrix(W, Win), ((pad, pad), (0, 0)))
        x_args = [_h_interp_pad(x, H, pad) for x in xs]   # (B, H+2p, Win, Ci)
    else:
        H, W = xs[0].shape[1:3]
        aw_pad = None
        x_args = [jnp.pad(x, ((0, 0), (pad, pad), (pad, pad), (0, 0))) for x in xs]

    coord_bias = (_coord_bias(w_bf[:, off:, :], H, W, ksize, pad, Cout)
                  if coord else None)

    in_specs, args = [], []
    for x in x_args:
        _, hh, ww, cc = x.shape
        in_specs.append(pl.BlockSpec((1, hh, ww, cc), lambda b: (b, 0, 0, 0)))
        args.append(x)
    if upsample:
        in_specs.append(pl.BlockSpec(aw_pad.shape, lambda b: (0, 0)))
        args.append(aw_pad)
    for wp_ in w_parts:
        in_specs.append(pl.BlockSpec(wp_.shape, lambda b: (0, 0, 0)))
        args.append(wp_)
    in_specs += [pl.BlockSpec((1, Cout), lambda b: (0, 0)),
                 pl.BlockSpec((1, Cout), lambda b: (0, 0))]
    args += [p["gamma"], p["beta"]]
    if coord_bias is not None:
        in_specs.append(pl.BlockSpec((H * W, Cout), lambda b: (0, 0)))
        args.append(coord_bias)
    if mul is not None:
        in_specs.append(pl.BlockSpec((1, 1, Cout), lambda b: (b, 0, 0)))
        args.append(mul.reshape(B, 1, Cout))

    kernel = functools.partial(
        _head_kernel, H=H, W=W, KH=ksize, KW=ksize, Cout=Cout, G=groups,
        n_in=len(xs), upsample=upsample,
        has_bias=coord_bias is not None, has_mul=mul is not None)

    return pl.pallas_call(
        kernel,
        out_shape=jax.ShapeDtypeStruct((B, H, W, Cout), jnp.float32),
        grid_spec=pltpu.PrefetchScalarGridSpec(
            num_scalar_prefetch=0, grid=(B,),
            in_specs=in_specs,
            out_specs=pl.BlockSpec((1, H, W, Cout), lambda b: (b, 0, 0, 0))),
        compiler_params=pltpu.CompilerParams(dimension_semantics=("parallel",)),
    )(*args)


# --------------------------------------------------------------------------
# Module glue (parameters, forward)
# --------------------------------------------------------------------------
def init_head(key, cin, cout, ksize):
    k_w, k_g, k_b = jax.random.split(key, 3)
    fan_in = float(cin * ksize * ksize)
    w = jax.random.normal(k_w, (ksize * ksize, cin, cout), jnp.float32) / jnp.sqrt(fan_in)
    gamma = 1.0 + 0.1 * jax.random.normal(k_g, (1, cout), jnp.float32)
    beta = 0.1 * jax.random.normal(k_b, (1, cout), jnp.float32)
    return {"w": w, "gamma": gamma, "beta": beta}


def fusion_head_forward(params, vis_feat, lang_feat, groups):
    def lang_vec(name):
        y = single_head([lang_feat[:, None, None, :]], params[name],
                        ksize=1, pad=0, coord=False, groups=groups)
        return y.reshape(y.shape[0], y.shape[-1])              # (B, Chid)

    def mutan(v, vname, lname):
        # mutan multiply is fused into the vis-head conv epilogue (mul=...).
        return single_head([v], params[vname], ksize=3, pad=1, coord=True,
                           groups=groups, mul=lang_vec(lname))

    m1 = mutan(vis_feat["res5"], "vis_trans1", "lang_trans1")
    m2 = mutan(vis_feat["res4"], "vis_trans2", "lang_trans2")
    m3 = mutan(vis_feat["res3"], "vis_trans3", "lang_trans3")

    h4, w4 = vis_feat["res4"].shape[1:3]
    # fuse_trans1: bilinear upsample fused into the conv head.
    m1ut = single_head([m1], params["fuse_trans1"], ksize=3, pad=1,
                       coord=False, groups=groups, upsample_to=(h4, w4))

    h3, w3 = vis_feat["res3"].shape[1:3]
    # fuse_trans2: channel-concat + bilinear upsample + conv, all fused
    # (upsample commutes with channel concat; conv weights split per input).
    m2ut = single_head([m1ut, m2], params["fuse_trans2"], ksize=3, pad=1,
                       coord=False, groups=groups, upsample_to=(h3, w3))

    # fuse_trans3: channel-concat + conv fused.
    return single_head([m2ut, m3], params["fuse_trans3"], ksize=3, pad=1,
                       coord=False, groups=groups)


# --------------------------------------------------------------------------
# Pure-JAX reference (for correctness check only; bf16 matmuls to match kernel)
# --------------------------------------------------------------------------
def add_coords(x):
    B, H, W, _ = x.shape
    coord = jnp.broadcast_to(_coord_grid(H, W)[None], (B, H, W, 2))
    return jnp.concatenate([x, coord], axis=-1)


def _ref_conv_gn_lrelu(x, w, gamma, beta, ksize, pad, groups):
    B, H, W, Cin = x.shape
    Cout = w.shape[-1]
    w_hwio = w.astype(jnp.bfloat16).reshape(ksize, ksize, Cin, Cout)
    y = lax.conv_general_dilated(x.astype(jnp.bfloat16), w_hwio, (1, 1),
                                 [(pad, pad), (pad, pad)],
                                 dimension_numbers=("NHWC", "HWIO", "NHWC"),
                                 preferred_element_type=jnp.float32)
    cg = Cout // groups
    yg = y.reshape(B, H, W, groups, cg)
    mean = jnp.mean(yg, axis=(1, 2, 4), keepdims=True)
    var = jnp.mean((yg - mean) ** 2, axis=(1, 2, 4), keepdims=True)
    yn = ((yg - mean) / jnp.sqrt(var + GN_EPS)).reshape(B, H, W, Cout)
    yn = yn * gamma.reshape(1, 1, 1, Cout) + beta.reshape(1, 1, 1, Cout)
    return jnp.where(yn > 0, yn, LEAKY_SLOPE * yn)


def _ref_single_head(x, p, *, ksize, pad, coord, groups):
    if coord:
        x = add_coords(x)
    return _ref_conv_gn_lrelu(x, p["w"], p["gamma"], p["beta"], ksize, pad, groups)


def _ref_upsample(x, h_out, w_out):
    ah = _interp_matrix(h_out, x.shape[1])
    aw = _interp_matrix(w_out, x.shape[2])
    y = jnp.einsum("oh,bhwc->bowc", ah, x)
    return jnp.einsum("pw,bowc->bopc", aw, y)


def _ref_forward(params, vis_feat, lang_feat, groups):
    def head(x, name, ksize, pad, coord):
        return _ref_single_head(x, params[name], ksize=ksize, pad=pad,
                                coord=coord, groups=groups)

    def mutan(v, vname, lname):
        vis = head(v, vname, 3, 1, True)
        lng = head(lang_feat[:, None, None, :], lname, 1, 0, False)
        return vis * lng

    m1 = mutan(vis_feat["res5"], "vis_trans1", "lang_trans1")
    m2 = mutan(vis_feat["res4"], "vis_trans2", "lang_trans2")
    m3 = mutan(vis_feat["res3"], "vis_trans3", "lang_trans3")
    h4, w4 = vis_feat["res4"].shape[1:3]
    m1ut = head(_ref_upsample(m1, h4, w4), "fuse_trans1", 3, 1, False)
    m2c = jnp.concatenate([m1ut, m2], axis=-1)
    h3, w3 = vis_feat["res3"].shape[1:3]
    m2ut = head(_ref_upsample(m2c, h3, w3), "fuse_trans2", 3, 1, False)
    m3c = jnp.concatenate([m2ut, m3], axis=-1)
    return head(m3c, "fuse_trans3", 3, 1, False)


# --------------------------------------------------------------------------
if __name__ == "__main__":
    # Scaled-down dims (original: res5=2048, res4=1024, res3=512, lang/hid=1024, fuse=512)
    B = 2
    C5, C4, C3 = 128, 64, 32
    CL = CHID = 64
    CFUSE = 32
    G = 8                      # GroupNorm groups
    H5 = W5 = 4
    H4 = W4 = 8
    H3 = W3 = 16

    key = jax.random.PRNGKey(0)
    ks = jax.random.split(key, 16)
    vis_feat = {
        "res5": jax.random.normal(ks[0], (B, H5, W5, C5), jnp.float32),
        "res4": jax.random.normal(ks[1], (B, H4, W4, C4), jnp.float32),
        "res3": jax.random.normal(ks[2], (B, H3, W3, C3), jnp.float32),
    }
    lang_feat = jax.random.normal(ks[3], (B, CL), jnp.float32)

    params = {
        "vis_trans1": init_head(ks[4], C5 + 2, CHID, 3),
        "lang_trans1": init_head(ks[5], CL, CHID, 1),
        "vis_trans2": init_head(ks[6], C4 + 2, CHID, 3),
        "lang_trans2": init_head(ks[7], CL, CHID, 1),
        "vis_trans3": init_head(ks[8], C3 + 2, CHID, 3),
        "lang_trans3": init_head(ks[9], CL, CHID, 1),
        "fuse_trans1": init_head(ks[10], CHID, CFUSE, 3),
        "fuse_trans2": init_head(ks[11], CHID + CFUSE, CFUSE, 3),
        "fuse_trans3": init_head(ks[12], CHID + CFUSE, CFUSE, 3),
    }

    out = fusion_head_forward(params, vis_feat, lang_feat, G)
    out = jax.block_until_ready(out)
    assert out.shape == (B, H3, W3, CFUSE), out.shape

    ref = jax.block_until_ready(_ref_forward(params, vis_feat, lang_feat, G))
    if not jnp.allclose(out, ref, rtol=1e-2, atol=1e-2):
        raise AssertionError(
            f"Pallas/reference mismatch, max abs err = {jnp.max(jnp.abs(out - ref))}")

    print("KERNEL_OK")
</pallas_src>

<mosaic_0001>
module attributes {stable_mosaic.version = 11 : i64} {
  func.func @_head_kernel(%arg0: i32, %arg1: memref<1x1x1x64xf32, #tpu.memory_space<vmem>>, %arg2: memref<1x64x64xbf16, #tpu.memory_space<vmem>>, %arg3: memref<1x64xf32, #tpu.memory_space<vmem>>, %arg4: memref<1x64xf32, #tpu.memory_space<vmem>>, %arg5: memref<1x1x1x64xf32, #tpu.memory_space<vmem>>) attributes {dimension_semantics = [#tpu.dimension_semantics<parallel>], iteration_bounds = array<i64: 2>, scalar_prefetch = 0 : i64, scratch_operands = 0 : i64, tpu.core_type = #tpu.core_type<tc>, window_params = [{transform_indices = @transform_0, window_bounds = array<i64: 1, 1, 1, 64>}, {pipeline_mode = #tpu.pipeline_mode<synchronous>, transform_indices = @transform_1, window_bounds = array<i64: 1, 64, 64>}, {pipeline_mode = #tpu.pipeline_mode<synchronous>, transform_indices = @transform_2, window_bounds = array<i64: 1, 64>}, {pipeline_mode = #tpu.pipeline_mode<synchronous>, transform_indices = @transform_3, window_bounds = array<i64: 1, 64>}, {transform_indices = @transform_4, window_bounds = array<i64: 1, 1, 1, 64>}]} {
    %cst = arith.constant 0.000000e+00 : f32
    %0 = vector.broadcast %cst : f32 to vector<1x64xf32>
    %c0 = arith.constant 0 : index
    %c0_0 = arith.constant 0 : index
    %c0_1 = arith.constant 0 : index
    %c0_2 = arith.constant 0 : index
    %1 = vector.load %arg1[%c0, %c0_0, %c0_1, %c0_2] : memref<1x1x1x64xf32, #tpu.memory_space<vmem>>, vector<1x1x1x64xf32>
    %2 = vector.shape_cast %1 : vector<1x1x1x64xf32> to vector<1x1x64xf32>
    %3 = vector.shape_cast %2 : vector<1x1x64xf32> to vector<1x64xf32>
    %4 = arith.truncf %3 : vector<1x64xf32> to vector<1x64xbf16>
    %c0_3 = arith.constant 0 : index
    %c0_4 = arith.constant 0 : index
    %c0_5 = arith.constant 0 : index
    %5 = vector.load %arg2[%c0_3, %c0_4, %c0_5] : memref<1x64x64xbf16, #tpu.memory_space<vmem>>, vector<1x64x64xbf16>
    %6 = vector.shape_cast %5 : vector<1x64x64xbf16> to vector<64x64xbf16>
    %cst_6 = arith.constant dense<0.000000e+00> : vector<1x64xf32>
    %7 = tpu.matmul %4, %6, %cst_6 {dimension_numbers = #tpu.dot_dimension_numbers<[1], [0], [0], [1], [0, 0, 1, 1], [], []>} : vector<1x64xbf16>, vector<64x64xbf16>, vector<1x64xf32> -> vector<1x64xf32>
    %8 = arith.addf %0, %7 : vector<1x64xf32>
    %9 = tpu.iota {dimensions = array<i32: 0>} : vector<64x8xi32>
    %10 = tpu.iota {dimensions = array<i32: 1>} : vector<64x8xi32>
    %c8_i32 = arith.constant 8 : i32
    %11 = vector.broadcast %c8_i32 : i32 to vector<64x8xi32>
    %12 = arith.muli %10, %11 : vector<64x8xi32>
    %13 = arith.cmpi sge, %9, %12 : vector<64x8xi32>
    %c1_i32 = arith.constant 1 : i32
    %14 = vector.broadcast %c1_i32 : i32 to vector<64x8xi32>
    %15 = arith.addi %10, %14 : vector<64x8xi32>
    %c8_i32_7 = arith.constant 8 : i32
    %16 = vector.broadcast %c8_i32_7 : i32 to vector<64x8xi32>
    %17 = arith.muli %15, %16 : vector<64x8xi32>
    %18 = arith.cmpi slt, %9, %17 : vector<64x8xi32>
    %19 = arith.andi %13, %18 : vector<64x8xi1>
    %20 = arith.extui %19 : vector<64x8xi1> to vector<64x8xi32>
    %21 = arith.sitofp %20 : vector<64x8xi32> to vector<64x8xf32>
    %22 = tpu.iota {dimensions = array<i32: 1>} : vector<8x64xi32>
    %23 = tpu.iota {dimensions = array<i32: 0>} : vector<8x64xi32>
    %c8_i32_8 = arith.constant 8 : i32
    %24 = vector.broadcast %c8_i32_8 : i32 to vector<8x64xi32>
    %25 = arith.muli %23, %24 : vector<8x64xi32>
    %26 = arith.cmpi sge, %22, %25 : vector<8x64xi32>
    %c1_i32_9 = arith.constant 1 : i32
    %27 = vector.broadcast %c1_i32_9 : i32 to vector<8x64xi32>
    %28 = arith.addi %23, %27 : vector<8x64xi32>
    %c8_i32_10 = arith.constant 8 : i32
    %29 = vector.broadcast %c8_i32_10 : i32 to vector<8x64xi32>
    %30 = arith.muli %28, %29 : vector<8x64xi32>
    %31 = arith.cmpi slt, %22, %30 : vector<8x64xi32>
    %32 = arith.andi %26, %31 : vector<8x64xi1>
    %33 = arith.extui %32 : vector<8x64xi1> to vector<8x64xi32>
    %34 = arith.sitofp %33 : vector<8x64xi32> to vector<8x64xf32>
    %cst_11 = arith.constant dense<0.000000e+00> : vector<64xf32>
    %35 = vector.multi_reduction <add>, %8, %cst_11 [0] : vector<1x64xf32> to vector<64xf32>
    %36 = vector.shape_cast %35 : vector<64xf32> to vector<1x64xf32>
    %37 = arith.mulf %8, %8 : vector<1x64xf32>
    %cst_12 = arith.constant dense<0.000000e+00> : vector<64xf32>
    %38 = vector.multi_reduction <add>, %37, %cst_12 [0] : vector<1x64xf32> to vector<64xf32>
    %39 = vector.shape_cast %38 : vector<64xf32> to vector<1x64xf32>
    %cst_13 = arith.constant dense<0.000000e+00> : vector<1x8xf32>
    %40 = tpu.matmul %36, %21, %cst_13 {dimension_numbers = #tpu.dot_dimension_numbers<[1], [0], [0], [1], [0, 0, 1, 1], [], []>} : vector<1x64xf32>, vector<64x8xf32>, vector<1x8xf32> -> vector<1x8xf32>
    %cst_14 = arith.constant 8.000000e+00 : f32
    %41 = vector.broadcast %cst_14 : f32 to vector<1x8xf32>
    %42 = arith.divf %40, %41 : vector<1x8xf32>
    %cst_15 = arith.constant dense<0.000000e+00> : vector<1x8xf32>
    %43 = tpu.matmul %39, %21, %cst_15 {dimension_numbers = #tpu.dot_dimension_numbers<[1], [0], [0], [1], [0, 0, 1, 1], [], []>} : vector<1x64xf32>, vector<64x8xf32>, vector<1x8xf32> -> vector<1x8xf32>
    %cst_16 = arith.constant 8.000000e+00 : f32
    %44 = vector.broadcast %cst_16 : f32 to vector<1x8xf32>
    %45 = arith.divf %43, %44 : vector<1x8xf32>
    %46 = arith.mulf %42, %42 : vector<1x8xf32>
    %47 = arith.subf %45, %46 : vector<1x8xf32>
    %cst_17 = arith.constant 9.99999974E-6 : f32
    %48 = vector.broadcast %cst_17 : f32 to vector<1x8xf32>
    %49 = arith.addf %47, %48 : vector<1x8xf32>
    %50 = math.rsqrt %49 : vector<1x8xf32>
    %cst_18 = arith.constant dense<0.000000e+00> : vector<1x64xf32>
    %51 = tpu.matmul %42, %34, %cst_18 {dimension_numbers = #tpu.dot_dimension_numbers<[1], [0], [0], [1], [0, 0, 1, 1], [], []>} : vector<1x8xf32>, vector<8x64xf32>, vector<1x64xf32> -> vector<1x64xf32>
    %cst_19 = arith.constant dense<0.000000e+00> : vector<1x64xf32>
    %52 = tpu.matmul %50, %34, %cst_19 {dimension_numbers = #tpu.dot_dimension_numbers<[1], [0], [0], [1], [0, 0, 1, 1], [], []>} : vector<1x8xf32>, vector<8x64xf32>, vector<1x64xf32> -> vector<1x64xf32>
    %53 = arith.subf %8, %51 : vector<1x64xf32>
    %54 = arith.mulf %53, %52 : vector<1x64xf32>
    %c0_20 = arith.constant 0 : index
    %c0_21 = arith.constant 0 : index
    %55 = vector.load %arg3[%c0_20, %c0_21] : memref<1x64xf32, #tpu.memory_space<vmem>>, vector<1x64xf32>
    %56 = arith.mulf %54, %55 : vector<1x64xf32>
    %c0_22 = arith.constant 0 : index
    %c0_23 = arith.constant 0 : index
    %57 = vector.load %arg4[%c0_22, %c0_23] : memref<1x64xf32, #tpu.memory_space<vmem>>, vector<1x64xf32>
    %58 = arith.addf %56, %57 : vector<1x64xf32>
    %cst_24 = arith.constant 0.000000e+00 : f32
    %59 = vector.broadcast %cst_24 : f32 to vector<1x64xf32>
    %60 = arith.cmpf ogt, %58, %59 : vector<1x64xf32>
    %cst_25 = arith.constant 0.00999999977 : f32
    %61 = vector.broadcast %cst_25 : f32 to vector<1x64xf32>
    %62 = arith.mulf %61, %58 : vector<1x64xf32>
    %63 = arith.select %60, %58, %62 : vector<1x64xi1>, vector<1x64xf32>
    %64 = vector.shape_cast %63 : vector<1x64xf32> to vector<1x1x64xf32>
    %c0_26 = arith.constant 0 : index
    %c0_27 = arith.constant 0 : index
    %c0_28 = arith.constant 0 : index
    %c0_29 = arith.constant 0 : index
    %65 = vector.load %arg5[%c0_26, %c0_27, %c0_28, %c0_29] : memref<1x1x1x64xf32, #tpu.memory_space<vmem>>, vector<1x1x1x64xf32>
    %66 = vector.shape_cast %65 : vector<1x1x1x64xf32> to vector<1x1x64xf32>
    %67 = vector.shape_cast %64 : vector<1x1x64xf32> to vector<1x1x1x64xf32>
    tpu.vector_store %arg5[%c0_26, %c0_27, %c0_28, %c0_29], %67 {strides = array<i32>} : memref<1x1x1x64xf32, #tpu.memory_space<vmem>>, vector<1x1x1x64xf32>,
    return
  }
  func.func @transform_0(%arg0: i32) -> (i32, i32, i32, i32) {
    %c0_i32 = arith.constant 0 : i32
    %c0_i32_0 = arith.constant 0 : i32
    %c0_i32_1 = arith.constant 0 : i32
    %c0_i32_2 = arith.constant 0 : i32
    return %arg0, %c0_i32, %c0_i32_0, %c0_i32_1 : i32, i32, i32, i32
  }
  func.func @transform_1(%arg0: i32) -> (i32, i32, i32) {
    %c0_i32 = arith.constant 0 : i32
    %c0_i32_0 = arith.constant 0 : i32
    %c0_i32_1 = arith.constant 0 : i32
    %c0_i32_2 = arith.constant 0 : i32
    return %c0_i32, %c0_i32_0, %c0_i32_1 : i32, i32, i32
  }
  func.func @transform_2(%arg0: i32) -> (i32, i32) {
    %c0_i32 = arith.constant 0 : i32
    %c0_i32_0 = arith.constant 0 : i32
    %c0_i32_1 = arith.constant 0 : i32
    return %c0_i32, %c0_i32_0 : i32, i32
  }
  func.func @transform_3(%arg0: i32) -> (i32, i32) {
    %c0_i32 = arith.constant 0 : i32
    %c0_i32_0 = arith.constant 0 : i32
    %c0_i32_1 = arith.constant 0 : i32
    return %c0_i32, %c0_i32_0 : i32, i32
  }
  func.func @transform_4(%arg0: i32) -> (i32, i32, i32, i32) {
    %c0_i32 = arith.constant 0 : i32
    %c0_i32_0 = arith.constant 0 : i32
    %c0_i32_1 = arith.constant 0 : i32
    %c0_i32_2 = arith.constant 0 : i32
    return %arg0, %c0_i32, %c0_i32_0, %c0_i32_1 : i32, i32, i32, i32
  }
}

</mosaic_0001>

<bundles_post_ra>
// kernel: tpu_custom_call.1
= control target key start
LH: loop header
LB: loop body
LE: loop exit
PB: predicated region body
PF: predicated region fallthrough
CT: control target
= control target key end

     0   :  { %9 = vsyncpa [#allocation3], 0  ;;  %s1492_s0 = inlined_call_operand.hbm [shape: f32[2,1,1,64], index: 0, kind: input, shape index: {}]   ;;  %s1493_s1 = inlined_call_operand.hbm [shape: bf16[1,64,64], index: 1, kind: input, shape index: {}]   ;;  %s1494_s2 = inlined_call_operand.vmem [shape: f32[1,64], index: 2, kind: input, shape index: {}]   ;;  %s1495_s3 = inlined_call_operand.vmem [shape: f32[1,64], index: 3, kind: input, shape index: {}]   ;;  %s1496_s4 = inlined_call_operand.hbm [shape: f32[2,1,1,64], index: 4, kind: output, shape index: {}]  }
   0x1   :  { %11 = vsyncpa [#allocation3 + $0x1], 0 }
   0x2   :  { %12 = vsyncpa [#allocation6], 0 }
   0x3   :  { %13 = vsyncpa [#allocation4], 0 }
   0x4   :  { %15 = vsyncpa [#allocation4 + $0x1], 0  ;;  %s1157_s15 = smov 0   ;;  %s1159_s16 = smov 0  }
   0x5   :  { %s1161_s17 = smov 0   ;;  %s1163_s18 = smov 0  }
   0x6 LB: > { %s1178_s19 = sadd.s32 4294967295, %s1120_s18   ;;  %s765_s20 = sadd.s32 4294967294, %s1120_s18   ;;  %s1120_s18 = sphi %s1163_s18, %s1539_s18   ;;  %s1116_s17 = sphi %s1161_s17, %s1538_s17   ;;  %s1112_s16 = sphi %s1159_s16, %s1537_s16   ;;  %s1108_s15 = sphi %s1157_s15, %s1536_s15  }
   0x7   : > { %p41_p0 = scmp.ne.s32.totalorder %s1112_s16, %s1108_s15  ;;  %p1497_p1 = scmp.eq.s32.totalorder %s1178_s19, 0 }
   0x8   : > { %p134_p3 = scmp.eq.s32.totalorder %s765_s20, 1  ;;  %p766_p5 = scmp.ge.s32.totalorder %s1120_s18, 1 }
   0x9   : > { %p1187_p4 = por %p1497_p1, %p41_p0  ;;  %p141_p7 = scmp.lt.s32.totalorder %s1120_s18, 3 }
   0xa   : > { %p1192_p6 = por %p134_p3, %p41_p0  ;;  %s1122_s24 = smov [#allocation5]  }
   0xb   : > { %s1503_s21 = scalar_select %p1187_p4, 1, 0 }
   0xc   : > { %s1504_s22 = scalar_select %p1192_p6, 1, 0 }
   0xd   : > { %p1197_p8 = pnand %p766_p5, %p141_p7  ;;  %s153_s25 = sshll.u32 %s1122_s24, 4  ;;  %s1201_s25 = int_to_ptr.vmem [resolvable:$true] %s153_s25 }
   0xe   : > { %s1213_s27 = sadd.s32 1, %s1120_s18   ;;  %s28_s28 = sadd.s32 1, %s1116_s17 }
   0xf   : > { %s1505_s23 = scalar_select %p1197_p8, 1, 0 }
  0x10   : > { %p930_p9 = pneg %p1197_p8  ;;  %s25_s29 = ssub.s32 %s1120_s18, %s1213_s27 }
  0x11   : > { %s992_s6 = scalar_lea.hbm %s1493_s1, 512 }
  0x12   : > { %p1208_p11 = pnand %p930_p9, %p1497_p1  ;;  %p993_p12 = scmp.ne.s32.totalorder %s1493_s1, %s992_s6 }
  0x13   : > { %p999_p5 = scmp.lt.u32.totalorder %s992_s6, %s1493_s1 }
  0x14   : > { %p994_p13 = pneg %p1208_p11 }
  0x16   : > { %p995_p0 = pnand %p994_p13, %p993_p12 }
  0x18   : > { %p996_p3 = pneg %p995_p0 }
  0x1a   : > { %p1001_p7 = pnand %p999_p5, %p996_p3 }
  0x1c   : > { %1004 = shalt.err (!%p1001_p7)
}
  0x1d   : > { %s1005_s11 = scalar_lea.vmem %s1201_s25, 512  ;;  %p1013_p2 = scmp.lt.s32.totalorder %s1201_s25, %s1201_s25 }
  0x1e   : > { %p1006_p9 = scmp.ne.s32.totalorder %s1201_s25, %s1005_s11  ;;  %p1014_p6 = scmp.lt.s32.totalorder %s1005_s11, %s1005_s11 }
  0x20   : > { %p1008_p10 = pnand %p1006_p9, %p994_p13  ;;  %p1015_p4 = por %p1014_p6, %p1013_p2 }
  0x22   : > { %p1009_p1 = pneg %p1008_p10 }
  0x24   : > { %p1016_p8 = pnand %p1015_p4, %p1009_p1 }
  0x26   : > { %1019 = shalt.err (!%p1016_p8)
}
  0x27   : > { %s1123_s12 = smov 64   ;;  %s1124_s13 = smov 4  }
  0x28   : > { %933 = dma.hbm_to_vmem [thread:$0]  (!%p1208_p11), %s1493_s1, 512, %s1201_s25, [#allocation6], %s1123_s12, %s1123_s12, %s1124_s13  }
  0x29   : > { %p26_p2 = scmp.eq.s32.totalorder %s25_s29, 0  ;;  %p35_p1 = scmp.ne.s32.totalorder %s1116_s17, %s1112_s16 }
  0x2a   : > { %p36_p4 = scmp.eq.s32.totalorder %s1120_s18, 0  ;;  %p943_p6 = scmp.lt.s32.totalorder %s1120_s18, 2 }
  0x2b   : > { %s1244_s24 = scalar_select %p26_p2, %s1116_s17, %s28_s28  }
  0x2c   : > { %p37_p8 = por %p36_p4, %p35_p1  ;;  %p1507_p10 = scmp.eq.s32.totalorder %s1178_s19, 1 }
  0x2d   : > { %s173_s5 = sand.u32 1, %s1116_s17   ;;  %s769_s6 = sshll.u32 %s1120_s18, 4 }
  0x2e   : > { %p1248_p12 = por %p1507_p10, %p35_p1  ;;  %s1257_s8 = scalar_lea.hbm %s1492_s0, %s769_s6 }
  0x2f   : > { %s176_s25 = scalar_lea.vmem [#allocation2], %s173_s5  ;;  %p1261_p11 = pnand %p943_p6, %p37_p8 }
  0x30   : > { %s183_s28 = sshll.u32 %s176_s25, 4  ;;  %s174_s9 = scalar_lea.sflag [#allocation3], %s173_s5  ;;  %s1259_s28 = int_to_ptr.vmem [resolvable:$true] %s183_s28 }
  0x31   : > { %s1020_s10 = scalar_lea.hbm %s1257_s8, 16  ;;  %p1022_p0 = pneg %p1261_p11 }
  0x32   : > { %p1021_p13 = scmp.ne.s32.totalorder %s1257_s8, %s1020_s10  ;;  %s1025_s13 = scalar_lea.hbm %s1492_s0, 32 }
  0x33   : > { %p1026_p7 = scmp.lt.u32.totalorder %s1257_s8, %s1492_s0  ;;  %p1027_p9 = scmp.lt.u32.totalorder %s1025_s13, %s1020_s10 }
  0x34   : > { %p1023_p3 = pnand %p1022_p0, %p1021_p13  ;;  %p1029_p1 = scmp.lt.u32.totalorder %s1020_s10, %s1257_s8 }
  0x35   : > { %p1028_p2 = por %p1027_p9, %p1026_p7 }
  0x36   : > { %p1024_p5 = pneg %p1023_p3 }
  0x37   : > { %p1030_p4 = por %p1029_p1, %p1028_p2 }
  0x39   : > { %p1031_p6 = pnand %p1030_p4, %p1024_p5 }
  0x3b   : > { %1034 = shalt.err (!%p1031_p6)
}
  0x3c   : > { %s1035_s5 = scalar_lea.vmem %s1259_s28, 16  ;;  %s1125_s6 = smov [#allocation2]  }
  0x3d   : > { %p1036_p8 = scmp.ne.s32.totalorder %s1259_s28, %s1035_s5  ;;  %s1040_s7 = sshll.u32 %s1125_s6, 4  ;;  %s1041_s7 = int_to_ptr.vmem [resolvable:$false] %s1040_s7 }
  0x3e   : > { %s1042_s26 = scalar_lea.vmem %s1041_s7, 32  ;;  %p1043_p3 = scmp.lt.s32.totalorder %s1259_s28, %s1041_s7 }
  0x3f   : > { %p1038_p10 = pnand %p1036_p8, %p1022_p0  ;;  %p1044_p7 = scmp.lt.s32.totalorder %s1042_s26, %s1035_s5 }
  0x41   : > { %p1039_p13 = pneg %p1038_p10  ;;  %p1045_p9 = por %p1044_p7, %p1043_p3 }
  0x43   : > { %p1046_p2 = pnand %p1045_p9, %p1039_p13 }
  0x45   : > { %1049 = shalt.err (!%p1046_p2)
}
  0x46   : > { %937 = dma.hbm_to_vmem [thread:$0]  (!%p1261_p11), %s1257_s8, 16, %s1259_s28, %s174_s9  }
  0x47   : > { %p1510_p5 = scmp.ne.s32.totalorder %s1505_s23, 0 }
  0x48   : > { %s1293_s25 = sand.u32 (!%p1510_p5), 1, %s1112_s16   ;;  %p1511_p0 = scmp.ne.s32.totalorder (!%p1510_p5), %s1503_s21, 0 }
  0x49   : > { %192 = sbr.rel (%p1510_p5) target bundleno = 780 (0x30c), region = 36  ;;  %s195_s10 = scalar_lea.sflag (!%p1510_p5), [#allocation3], %s1293_s25 }
  0x4a   : > { %s197_s11 = scalar_lea.vmem (!%p1510_p5), [#allocation2], %s1293_s25 }
  0x50   : > { %1095 = dma.done.wait (%p1511_p0), %s195_s10, 16  }
  0x51   : > { %1097 = vsyncadd (%p1511_p0), %s195_s10, 4294967280  ;;  %p1512_p1 = scmp.eq.s32.totalorder %s1178_s19, 0 }
  0x53   : > { %1099 = dma.done.wait (%p1512_p1), [#allocation6], 512   ;;  %p1513_p11 = pmov %p1512_p1 }
  0x54   : > { %v1126_v0 = vmov 0.0   ;;  %vm1500_vm0 = vmmov 0   ;;  %v303_v1 = vlaneseq  ;;  %v1128_v2 = vmov 0.0|0.0   ;;  %v986_v9 = vld [vmem:[#allocation5] sm:$0xff]   ;;  %v987_v12 = vld [vmem:[#allocation5 + $0x8] sm:$0xff]   ;;  %v988_v17 = vld [vmem:[#allocation5 + $0x10] sm:$0xff]  }
  0x55   : > { %1101 = vsyncadd (%p1513_p11), [#allocation6], 4294966784  ;;  %838 = vmatprep.subr.bf16.mxu0 %v1126_v0  ;;  %846 = vmatprep.mubr.msk.bf16.mxu0 %vm1500_vm0, %v1126_v0  ;;  %v1129_v19 = vmov 1.0|1.0   ;;  %v989_v23 = vld [vmem:[#allocation5 + $0x18] sm:$0xff]   ;;  %v1130_v39 = vmov 1.0  }
  0x56   : > { %898 = vmatprep.subr.bf16.mxu1 %v1128_v2  ;;  %866 = vmatprep.mubr.msk.f32.mxu1 %vm1500_vm0, %v1126_v0  ;;  %v1311_v3 = vshrl.u32 %v303_v1, 7  ;;  %v1313_v4 = vand.u32 127, %v303_v1  ;;  %v225_v24 = vld [vmem:[%s197_s11] sm:$0x1]  ;;  %s808_s29 = sshll.u32 %s1178_s19, 4  ;;  %s223_s9 = scalar_lea.vmem [#allocation7], %s1293_s25 }
  0x57   : > { %839 = vmatpush3.bf16.msra.mxu0 %v986_v9  ;;  %v226_v27 = vpack.c.bf16 %v225_v24, %v225_v24  ;;  %v670_v54 = vld [vmem:[%s1494_s2] sm:$0x1]  ;;  %s692_s12 = sshll.u32 %s223_s9, 4  ;;  %s1448_s20 = scalar_lea.hbm %s1496_s4, %s808_s29  ;;  %s1450_s12 = int_to_ptr.vmem [resolvable:$true] %s692_s12 }
  0x58   : > { %v305_v5 = vadd.s32 8, %v1311_v3  ;;  %v314_v6 = vmul.u32 8, %v1313_v4  ;;  %v323_v7 = vadd.s32 1, %v1313_v4  ;;  %v306_v8 = vadd.s32 16, %v1311_v3  ;;  %840 = vmatprep.subr.bf16.mxu0 %v1126_v0  ;;  %v672_v57 = vld [vmem:[%s1495_s3] sm:$0x1] }
  0x59   : > { %v307_v11 = vadd.s32 24, %v1311_v3  ;;  %v308_v13 = vadd.s32 32, %v1311_v3  ;;  %v309_v15 = vadd.s32 40, %v1311_v3  ;;  %v310_v18 = vadd.s32 48, %v1311_v3  ;;  %s680_s5 = scalar_lea.sflag [#allocation4], %s1293_s25  ;;  %s1050_s6 = scalar_lea.vmem %s1450_s12, 16 }
  0x5a   : > { %v324_v10 = vmul.u32 8, %v323_v7  ;;  %vm315_vm1 = vcmp.ge.s32.totalorder %v1311_v3, %v314_v6  ;;  %vm316_vm2 = vcmp.ge.s32.totalorder %v305_v5, %v314_v6  ;;  %vm317_vm6 = vcmp.ge.s32.totalorder %v306_v8, %v314_v6  ;;  %p1051_p4 = scmp.ne.s32.totalorder %s1450_s12, %s1050_s6  ;;  %s1131_s19 = smov [#allocation7]  }
  0x5b   : > { %vm318_vm9 = vcmp.ge.s32.totalorder %v307_v11, %v314_v6  ;;  %841 = vmatpush3.bf16.msra.mxu0 %v987_v12  ;;  %vm319_vm13 = vcmp.ge.s32.totalorder %v308_v13, %v314_v6  ;;  %v311_v21 = vadd.s32 56, %v1311_v3  ;;  %v359_v35 = vadd.s32 1, %v1311_v3  ;;  %s1054_s7 = sshll.u32 %s1131_s19, 4  ;;  %s1055_s7 = int_to_ptr.vmem [resolvable:$false] %s1054_s7 }
  0x5c   : > { %vm325_vm3 = vcmp.lt.s32.totalorder %v1311_v3, %v324_v10  ;;  %vm326_vm4 = vcmp.lt.s32.totalorder %v305_v5, %v324_v10  ;;  %vm327_vm7 = vcmp.lt.s32.totalorder %v306_v8, %v324_v10  ;;  %vm328_vm10 = vcmp.lt.s32.totalorder %v307_v11, %v324_v10  ;;  %842 = vmatprep.subr.bf16.mxu0 %v1126_v0  ;;  %p1052_p6 = pnand %p1051_p4, %p1248_p12  ;;  %s1056_s26 = scalar_lea.vmem %s1055_s7, 32 }
  0x5d   : > { %vm1324_vm5 = vmand %vm315_vm1, %vm325_vm3  ;;  %vm329_vm14 = vcmp.lt.s32.totalorder %v308_v13, %v324_v10  ;;  %vm320_vm1 = vcmp.ge.s32.totalorder %v309_v15, %v314_v6  ;;  %vm332_vm0 = vcmp.lt.s32.totalorder %v311_v21, %v324_v10  ;;  %v357_v36 = vmul.u32 8, %v1311_v3  ;;  %p1057_p10 = scmp.lt.s32.totalorder %s1450_s12, %s1055_s7  ;;  %p1058_p13 = scmp.lt.s32.totalorder %s1056_s26, %s1050_s6 }
  0x5e   : > { %vm1329_vm8 = vmand %vm316_vm2, %vm326_vm4  ;;  %vm330_vm2 = vcmp.lt.s32.totalorder %v309_v15, %v324_v10  ;;  %v360_v37 = vmul.u32 8, %v359_v35  ;;  %p1053_p8 = pneg %p1052_p6 }
  0x5f   : > { %vm899_vm11 = vmpackc.low %vm1329_vm8, %vm1324_vm5  ;;  %843 = vmatpush3.bf16.msra.mxu0 %v988_v17  ;;  %vm1427_vm5 = vcmp.ge.s32.totalorder %v1313_v4, %v357_v36  ;;  %p1059_p3 = por %p1058_p13, %p1057_p10 }
  0x60   : > { %900 = vmatpush3.bf16.msk.msra.mxu1 %vm899_vm11, %v1129_v19  ;;  %vm1344_vm12 = vmand %vm317_vm6, %vm327_vm7  ;;  %vm321_vm6 = vcmp.ge.s32.totalorder %v310_v18, %v314_v6  ;;  %vm331_vm7 = vcmp.lt.s32.totalorder %v310_v18, %v324_v10  ;;  %844 = vmatprep.subr.bf16.mxu0 %v1126_v0  ;;  %vm361_vm8 = vcmp.lt.s32.totalorder %v1313_v4, %v360_v37 }
  0x61   : > { %901 = vmatprep.subr.bf16.mxu1 %v1128_v2  ;;  %vm1350_vm15 = vmand %vm318_vm9, %vm328_vm10  ;;  %vm322_vm10 = vcmp.ge.s32.totalorder %v311_v21, %v314_v6  ;;  %p1060_p7 = pnand %p1059_p3, %p1053_p8 }
  0x62   : > { %vm1502_vm3 = vmpackc.low %vm1350_vm15, %vm1344_vm12 }
  0x63   : > { %vm1360_vm4 = vmand %vm319_vm13, %vm329_vm14  ;;  %845 = vmatpush3.bf16.msra.mxu0 %v989_v23 }
  0x64   : > { %903 = vmatpush3.bf16.msk.msra.mxu1 %vm1502_vm3, %v1129_v19  ;;  %vm1370_vm9 = vmand %vm320_vm1, %vm330_vm2  ;;  %vm259_vm3 = vcmask 523264   ;;  %910 = vmatprep.subr.bf16.mxu0 %v1128_v2 }
  0x65   : > { %904 = vmatprep.subr.bf16.mxu1 %v1128_v2  ;;  %vm905_vm13 = vmpackc.low %vm1370_vm9, %vm1360_vm4 }
  0x66   : > { %vm1379_vm14 = vmand %vm321_vm6, %vm331_vm7  ;;  %847 = vmatmul.mubr.msk.bf16.vlgmr.msra.gmra.mrb[0].mxu0 %vm259_vm3, %v226_v27 }
  0x67   : > { %vm1383_vm1 = vmand %vm322_vm10, %vm332_vm0  ;;  %912 = vmatpush3.bf16.msk.msra.mxu0 %vm899_vm11, %v1129_v19  ;;  %vm1530_vm0 = vmmov 0  }
  0x68   : > { %906 = vmatpush3.bf16.msk.msra.mxu1 %vm905_vm13, %v1129_v19  ;;  %vm908_vm2 = vmpackc.low %vm1383_vm1, %vm1379_vm14  ;;  %885 = vmatprep.mubr.msk.f32.mxu0 %vm1530_vm0, %v1126_v0 }
  0x69   : > { %907 = vmatprep.subr.bf16.mxu1 %v1128_v2  ;;  %913 = vmatprep.subr.bf16.mxu0 %v1128_v2  ;;  %vm1531_vm6 = vmpackc.low %vm1350_vm15, %vm1344_vm12  ;;  %vm521_vm12 = vcmask 64512  }
  0x6a   : > { %vm362_vm11 = vmand %vm1427_vm5, %vm361_vm8 }
  0x6b   : > { %915 = vmatpush3.bf16.msk.msra.mxu0 %vm1531_vm6, %v1129_v19 }
  0x6c   : > { %909 = vmatpush3.bf16.msk.msra.mxu1 %vm908_vm2, %v1129_v19  ;;  %916 = vmatprep.subr.bf16.mxu0 %v1128_v2 }
  0x6d   : > { %888 = vmatprep.subr.mxu1 %v1126_v0 }
  0x6f   : > { %918 = vmatpush3.bf16.msk.msra.mxu0 %vm905_vm13, %v1129_v19 }
  0x70   : > { %919 = vmatprep.subr.bf16.mxu0 %v1128_v2 }
  0x73   : > { %921 = vmatpush3.bf16.msk.msra.mxu0 %vm908_vm2, %v1129_v19 }
 0x139   : > { %v297_v30 = vpop.f32.mrb[0].mxu0 }
 0x13a   : > { %v366_v31 = vmul.f32 %v297_v30, %v297_v30  ;;  %v848_v32 = vpop.f32.mrb[1].mxu0  ;;  %867 = vmatmul.mubr.msk.f32.vlgmr.msra.gmra.mrb[0].mxu1 %vm259_vm3, %v297_v30 }
 0x13b   : > { %v300_v33 = vpop.f32.mrb[2].mxu0  ;;  %890 = vmatprep.mubr.msk.f32.mxu1 %vm1530_vm0, %v1126_v0  ;;  %889 = vmatpush3.msk.msra.mxu1 %vm362_vm11, %v1130_v39 }
 0x13c   : > { %v849_v34 = vpop.f32.mrb[3].mxu0  ;;  %886 = vmatmul.mubr.msk.f32.vlgmr.msra.gmra.mrb[4].mxu0 %vm259_vm3, %v366_v31  ;;  %893 = vmatprep.subr.mxu1 %v1126_v0  ;;  %vm677_vm3 = vcmask 516096  }
 0x20d   : > { %v437_v40 = vpop.f32.mrb[0].mxu1 }
 0x20e   : > { %v442_v41 = vmul.f32 0.125, %v437_v40  ;;  %v868_v42 = vpop.f32.mrb[1].mxu1 }
 0x20f   : > { %v512_v43 = vpop.f32.mrb[4].mxu0 }
 0x210   : > { %v517_v44 = vmul.f32 %v442_v41, %v442_v41  ;;  %v516_v45 = vmul.f32 0.125, %v512_v43  ;;  %v887_v46 = vpop.f32.mrb[5].mxu0  ;;  %891 = vmatmul.mubr.msk.f32.vlgmr.msra.gmra.mrb[2].mxu1 %vm521_vm12, %v442_v41 }
 0x211   : > { %894 = vmatpush3.msk.msra.mxu1 %vm362_vm11, %v1130_v39  ;;  %895 = vmatprep.mubr.msk.f32.mxu1 %vm1530_vm0, %v1126_v0 }
 0x212   : > { %v518_v47 = vsub.f32 %v516_v45, %v517_v44 }
 0x214   : > { %v519_v48 = vadd.f32 1e-05, %v518_v47 }
 0x216   : > { %990 = vrsqrt.f32 %v519_v48 }
 0x220   : > { %v991_v49 = vpop.eup %990 }
 0x221   : > { %896 = vmatmul.mubr.msk.f32.vlgmr.msra.gmra.mrb[4].mxu1 %vm521_vm12, %v991_v49 }
 0x2e3   : > { %v591_v50 = vpop.f32.mrb[2].mxu1 }
 0x2e4   : > { %v668_v51 = vsub.f32 %v297_v30, %v591_v50  ;;  %v892_v52 = vpop.f32.mrb[3].mxu1 }
 0x2f4   : > { %v664_v53 = vpop.f32.mrb[4].mxu1 }
 0x2f5   : > { %v669_v55 = vmul.f32 %v668_v51, %v664_v53  ;;  %v897_v56 = vpop.f32.mrb[5].mxu1 }
 0x2f7   : > { %v671_v58 = vmul.f32 %v670_v54, %v669_v55 }
 0x2f9   : > { %v673_v59 = vadd.f32 %v672_v57, %v671_v58 }
 0x2fb   : > { %vm674_vm15 = vcmp.gt.f32.partialorder %v673_v59, 0.0  ;;  %v675_v60 = vmul.f32 0.01, %v673_v59 }
 0x2fd   : > { %v676_v61 = vsel %vm674_vm15, %v673_v59, %v675_v60 }
 0x2fe   : > { %678 = vst.msk [vmem:[%s223_s9] sm:$0x1] %vm677_vm3, %v676_v61 }
 0x2ff   : > { %1063 = shalt.err (!%p1060_p7)
}
 0x300   : > { %s1064_s25 = scalar_lea.hbm %s1448_s20, 16  ;;  %s1068_s21 = scalar_lea.hbm %s1496_s4, 32 }
 0x301   : > { %p1065_p9 = scmp.ne.s32.totalorder %s1448_s20, %s1064_s25  ;;  %p1069_p0 = scmp.lt.u32.totalorder %s1448_s20, %s1496_s4 }
 0x302   : > { %p1070_p1 = scmp.lt.u32.totalorder %s1068_s21, %s1064_s25  ;;  %p1072_p4 = scmp.lt.u32.totalorder %s1064_s25, %s1448_s20 }
 0x303   : > { %p1066_p2 = pnand %p1065_p9, %p1248_p12 }
 0x304   : > { %p1071_p11 = por %p1070_p1, %p1069_p0 }
 0x305   : > { %p1067_p5 = pneg %p1066_p2 }
 0x306   : > { %p1073_p6 = por %p1072_p4, %p1071_p11 }
 0x308   : > { %p1074_p8 = pnand %p1073_p6, %p1067_p5 }
 0x30a   : > { %1077 = shalt.err (!%p1074_p8)
}
 0x30b   : > { %928 = dma.vmem_to_hbm [thread:$0]  (%p1248_p12), %s1450_s12, 16, %s1448_s20, %s680_s5  }
 0x30c PF: > { %s704_s28 = sand.u32 1, %s1108_s15   ;;  %p1534_p10 = scmp.ne.s32.totalorder %s1504_s22, 0 }
 0x30d   : > { %p1535_p13 = scmp.ge.s32.totalorder %s1120_s18, 2  ;;  %s705_s29 = scalar_lea.sflag [#allocation4], %s704_s28 }
 0x30f   : > { %p939_p3 = pnand %p1535_p13, %p1534_p10 }
 0x311   : > { %1103 = dma.done.wait (!%p939_p3), %s705_s29, 16  }
 0x312   : > { %1105 = vsyncadd (!%p939_p3), %s705_s29, 4294967280  ;;  %p18_p7 = scmp.ge.s32.totalorder %s1213_s27, 4   ;;  %s1536_s15 = smov %s1112_s16 }
 0x313   : > { %s1537_s16 = smov %s1116_s17  ;;  %s1538_s17 = smov %s1244_s24 }
 0x314   : > { %s1539_s18 = smov %s1213_s27  ;;  %20 = sbr.rel (!%p18_p7) target bundleno = 6 (0x6), region = 85 }
 0x31b   :  { %709 = vsyncpa [#allocation3], 1 }
 0x31c   :  { %711 = vsyncpa [#allocation3 + $0x1], 1 }
 0x31d   :  { %712 = vsyncpa [#allocation6], 1 }
 0x31e   :  { %713 = vsyncpa [#allocation4], 1 }
 0x31f   :  { %715 = vsyncpa [#allocation4 + $0x1], 1 }

</bundles_post_ra>
